<compile_context>
chip_gen: v6e
topology: v6e:2x2x1
jax: 0.10.0
libtpu: 0.0.40
codegen_flags: <defaults>
</compile_context>

<pallas_src>
import jax
import jax.numpy as jnp
from jax.experimental import pallas as pl
from jax.experimental.pallas import tpu as pltpu


def adv_fused_kernel(x_ref, w1c_ref, b1c_ref, w2bd_ref, b2c_ref, out_ref):
    """All adversary heads fused: Linear -> Tanh -> Linear in one invocation.

    x:    (B, H)
    w1c:  (H, A*H)    per-head W1 (already (in,out)) concatenated on the out axis
    b1c:  (1, A*H)
    w2bd: (A*H, A*O)  block-diagonal: head a's W2 in rows [a*H,(a+1)*H), cols [a*O,(a+1)*O)
    b2c:  (1, A*O)
    out:  (B, A*O)    lane-dense slab, split per head in the wrapper
    """
    x = x_ref[...]
    h = jnp.tanh(
        jnp.dot(x, w1c_ref[...], preferred_element_type=jnp.float32) + b1c_ref[...]
    )
    y = jnp.dot(h, w2bd_ref[...], preferred_element_type=jnp.float32) + b2c_ref[...]
    out_ref[...] = y.astype(out_ref.dtype)


def adv_nn_forward(x, w1, b1, w2, b2):
    """AdvNN forward (eval semantics; dropout = identity).

    x : (B, H)
    w1: (A, H, H)  pre-transposed per-head weights (in, out) == pytorch_W1.T
    b1: (A, 1, H)
    w2: (A, H, O)  pre-transposed per-head weights (in, out) == pytorch_W2.T
    b2: (A, 1, O)
    Returns a stacked (A, B, O) array; out[i] == adversary i's output
    (equivalent to the PyTorch forward's list entry i).
    """
    A, H, _ = w1.shape
    B = x.shape[0]
    O = w2.shape[-1]

    # --- host-side (traced once) weight re-layout for the fused kernel -------
    # Layer 1: concatenate per-head W1 along the output dimension.
    w1_cat = jnp.transpose(w1, (1, 0, 2)).reshape(H, A * H)            # (H, A*H)
    b1_cat = b1.reshape(1, A * H)                                      # (1, A*H)
    # Layer 2: block-diagonal so all heads go through one matmul.
    w2_bd = (
        jnp.eye(A, dtype=w2.dtype)[:, None, :, None] * w2[:, :, None, :]
    ).reshape(A * H, A * O)                                            # (A*H, A*O)
    b2_cat = b2.reshape(1, A * O)                                      # (1, A*O)

    vmem = pl.BlockSpec(memory_space=pltpu.MemorySpace.VMEM)
    out = pl.pallas_call(
        adv_fused_kernel,
        out_shape=jax.ShapeDtypeStruct((B, A * O), jnp.float32),
        # No grid: one invocation; everything (weights ~9 KB) lives in VMEM.
        in_specs=[vmem, vmem, vmem, vmem, vmem],
        out_specs=vmem,
    )(x, w1_cat, b1_cat, w2_bd, b2_cat)

    # (B, A*O) slab -> (A, B, O) stacked heads (no list of device slices).
    return jnp.moveaxis(out.reshape(B, A, O), 1, 0)


def reference_forward(x, w1, b1, w2, b2):
    res = []
    for i in range(w1.shape[0]):
        h = jnp.tanh(x @ w1[i] + b1[i])
        res.append(h @ w2[i] + b2[i])
    return res


if __name__ == "__main__":
    # Small shapes consistent with the module: hid_size=32, out_size=4,
    # adv_count=2, adv_midlayers_size=[-1] (mid == hid), batch=8.
    B, HID, OUT, ADV = 8, 32, 4, 2

    key = jax.random.PRNGKey(0)
    kx, k1, k2, k3, k4 = jax.random.split(key, 5)

    x = jax.random.normal(kx, (B, HID), dtype=jnp.float32)
    # Deterministic synthetic parameters (pre-transposed: (in, out)).
    w1 = jax.random.normal(k1, (ADV, HID, HID), dtype=jnp.float32) * 0.1
    b1 = jax.random.normal(k2, (ADV, 1, HID), dtype=jnp.float32) * 0.1
    w2 = jax.random.normal(k3, (ADV, HID, OUT), dtype=jnp.float32) * 0.1
    b2 = jax.random.normal(k4, (ADV, 1, OUT), dtype=jnp.float32) * 0.1

    out = adv_nn_forward(x, w1, b1, w2, b2)
    out = jax.block_until_ready(out)
    assert out.shape == (ADV, B, OUT)

    refs = reference_forward(x, w1, b1, w2, b2)
    for i, r in enumerate(refs):
        assert jnp.allclose(out[i], r, atol=1e-4, rtol=1e-5), f"head {i} mismatch"

    print("KERNEL_OK")
</pallas_src>

<mosaic_0001>
module attributes {stable_mosaic.version = 11 : i64} {
  func.func @adv_fused_kernel(%arg0: memref<8x32xf32, #tpu.memory_space<vmem>>, %arg1: memref<32x64xf32, #tpu.memory_space<vmem>>, %arg2: memref<1x64xf32, #tpu.memory_space<vmem>>, %arg3: memref<64x8xf32, #tpu.memory_space<vmem>>, %arg4: memref<1x8xf32, #tpu.memory_space<vmem>>, %arg5: memref<8x8xf32, #tpu.memory_space<vmem>>) attributes {dimension_semantics = [], scalar_prefetch = 0 : i64, scratch_operands = 0 : i64, tpu.core_type = #tpu.core_type<tc>} {
    %c0 = arith.constant 0 : index
    %c0_0 = arith.constant 0 : index
    %0 = vector.load %arg0[%c0, %c0_0] : memref<8x32xf32, #tpu.memory_space<vmem>>, vector<8x32xf32>
    %c0_1 = arith.constant 0 : index
    %c0_2 = arith.constant 0 : index
    %1 = vector.load %arg1[%c0_1, %c0_2] : memref<32x64xf32, #tpu.memory_space<vmem>>, vector<32x64xf32>
    %cst = arith.constant dense<0.000000e+00> : vector<8x64xf32>
    %2 = tpu.matmul %0, %1, %cst {dimension_numbers = #tpu.dot_dimension_numbers<[1], [0], [0], [1], [0, 0, 1, 1], [], []>} : vector<8x32xf32>, vector<32x64xf32>, vector<8x64xf32> -> vector<8x64xf32>
    %c0_3 = arith.constant 0 : index
    %c0_4 = arith.constant 0 : index
    %3 = vector.load %arg2[%c0_3, %c0_4] : memref<1x64xf32, #tpu.memory_space<vmem>>, vector<1x64xf32>
    %4 = vector.broadcast %3 : vector<1x64xf32> to vector<8x64xf32>
    %5 = arith.addf %2, %4 : vector<8x64xf32>
    %6 = math.tanh %5 : vector<8x64xf32>
    %c0_5 = arith.constant 0 : index
    %c0_6 = arith.constant 0 : index
    %7 = vector.load %arg3[%c0_5, %c0_6] : memref<64x8xf32, #tpu.memory_space<vmem>>, vector<64x8xf32>
    %cst_7 = arith.constant dense<0.000000e+00> : vector<8x8xf32>
    %8 = tpu.matmul %6, %7, %cst_7 {dimension_numbers = #tpu.dot_dimension_numbers<[1], [0], [0], [1], [0, 0, 1, 1], [], []>} : vector<8x64xf32>, vector<64x8xf32>, vector<8x8xf32> -> vector<8x8xf32>
    %c0_8 = arith.constant 0 : index
    %c0_9 = arith.constant 0 : index
    %9 = vector.load %arg4[%c0_8, %c0_9] : memref<1x8xf32, #tpu.memory_space<vmem>>, vector<1x8xf32>
    %10 = vector.broadcast %9 : vector<1x8xf32> to vector<8x8xf32>
    %11 = arith.addf %8, %10 : vector<8x8xf32>
    %c0_10 = arith.constant 0 : index
    %c0_11 = arith.constant 0 : index
    %12 = vector.load %arg5[%c0_10, %c0_11] : memref<8x8xf32, #tpu.memory_space<vmem>>, vector<8x8xf32>
    tpu.vector_store %arg5[%c0_10, %c0_11], %11 {strides = array<i32>} : memref<8x8xf32, #tpu.memory_space<vmem>>, vector<8x8xf32>,
    return
  }
}

</mosaic_0001>

<bundles_post_ra>
// kernel: tpu_custom_call.1
= control target key start
LH: loop header
LB: loop body
LE: loop exit
PB: predicated region body
PF: predicated region fallthrough
CT: control target
= control target key end

     0   :  { %v288_v1 = vmov 0.0   ;;  %vm289_vm0 = vmmov 0   ;;  %s369_s0 = inlined_call_operand.vmem [shape: f32[8,32], index: 0, kind: input, shape index: {}]   ;;  %s370_s1 = inlined_call_operand.vmem [shape: f32[32,64], index: 1, kind: input, shape index: {}]   ;;  %s371_s2 = inlined_call_operand.vmem [shape: f32[1,64], index: 2, kind: input, shape index: {}]   ;;  %s372_s3 = inlined_call_operand.vmem [shape: f32[64,8], index: 3, kind: input, shape index: {}]   ;;  %s373_s4 = inlined_call_operand.vmem [shape: f32[1,8], index: 4, kind: input, shape index: {}]   ;;  %s374_s5 = inlined_call_operand.hbm [shape: f32[8,8], index: 5, kind: output, shape index: {}]  }
   0x1   :  { %v25_v0 = vld [vmem:[%s370_s1 + $0x18] sm:$0xff]  ;;  %231 = vmatprep.subr.mxu0 %v288_v1  ;;  %v24_v2 = vld [vmem:[%s370_s1 + $0x10] sm:$0xff]  ;;  %239 = vmatprep.mubr.msk.f32.mxu0 %vm289_vm0, %v288_v1 }
   0x2   :  { %232 = vmatpush3.msra.mxu0 %v25_v0  ;;  %242 = vmatprep.subr.mxu1 %v288_v1 }
   0x3   :  { %10 = vsyncpa [#allocation3], 0  ;;  %233 = vmatprep.subr.mxu0 %v288_v1  ;;  %v23_v3 = vld [vmem:[%s370_s1 + $0x8] sm:$0xff]  ;;  %258 = vmatprep.mubr.msk.f32.mxu1 %vm289_vm0, %v288_v1  ;;  %v22_v4 = vld [vmem:[%s370_s1] sm:$0xff]  ;;  %vm33_vm1 = vcmask 261120   ;;  %vm123_vm2 = vcmask 523264  }
   0x4   :  { %234 = vmatpush3.msra.mxu0 %v24_v2  ;;  %v21_v5 = vld [vmem:[%s369_s0] sm:$0xff]  ;;  %v115_v6 = vld [vmem:[%s372_s3 + $0x38] sm:$0xff]  ;;  %v114_v7 = vld [vmem:[%s372_s3 + $0x30] sm:$0xff]  ;;  %s290_s21 = smov [#allocation2]   ;;  %vm197_vm3 = vcmask 64512  }
   0x5   :  { %235 = vmatprep.subr.mxu0 %v288_v1  ;;  %243 = vmatpush3.msra.mxu1 %v115_v6  ;;  %v113_v8 = vld [vmem:[%s372_s3 + $0x28] sm:$0xff]  ;;  %v112_v9 = vld [vmem:[%s372_s3 + $0x20] sm:$0xff]  ;;  %v111_v10 = vld [vmem:[%s372_s3 + $0x18] sm:$0xff] }
   0x6   :  { %236 = vmatpush3.msra.mxu0 %v23_v3  ;;  %244 = vmatprep.subr.mxu1 %v288_v1  ;;  %v110_v11 = vld [vmem:[%s372_s3 + $0x10] sm:$0xff]  ;;  %v109_v12 = vld [vmem:[%s372_s3 + $0x8] sm:$0xff]  ;;  %v108_v13 = vld [vmem:[%s372_s3] sm:$0xff]  ;;  %s205_s3 = sshll.u32 %s290_s21, 4  ;;  %s206_s3 = int_to_ptr.vmem [resolvable:$true] %s205_s3 }
   0x7   :  { %237 = vmatprep.subr.mxu0 %v288_v1  ;;  %245 = vmatpush3.msra.mxu1 %v114_v7  ;;  %v213_v14 = vld [vmem:[%s371_s2] ss:$0 sm:$0xff]  ;;  %s266_s2 = scalar_lea.vmem %s206_s3, 128  ;;  %p271_p1 = scmp.lt.s32.totalorder %s206_s3, %s206_s3 }
   0x8   :  { %238 = vmatpush3.msra.mxu0 %v22_v4  ;;  %246 = vmatprep.subr.mxu1 %v288_v1  ;;  %v215_v19 = vld [vmem:[%s373_s4] ss:$0 sm:$0xff]  ;;  %p267_p0 = scmp.ne.s32.totalorder %s206_s3, %s266_s2  ;;  %p272_p2 = scmp.lt.s32.totalorder %s266_s2, %s266_s2 }
   0x9   :  { %240 = vmatmul.mubr.msk.f32.vlgmr.msra.gmra.mxu0 %vm33_vm1, %v21_v5  ;;  %247 = vmatpush3.msra.mxu1 %v113_v8 }
   0xa   :  { %248 = vmatprep.subr.mxu1 %v288_v1  ;;  %p273_p3 = por %p272_p2, %p271_p1 }
   0xb   :  { %249 = vmatpush3.msra.mxu1 %v112_v9 }
   0xc   :  { %250 = vmatprep.subr.mxu1 %v288_v1  ;;  %p274_p4 = pnand %p273_p3, %p267_p0 }
   0xd   :  { %251 = vmatpush3.msra.mxu1 %v111_v10 }
   0xe   :  { %252 = vmatprep.subr.mxu1 %v288_v1 }
   0xf   :  { %253 = vmatpush3.msra.mxu1 %v110_v11 }
  0x10   :  { %254 = vmatprep.subr.mxu1 %v288_v1 }
  0x11   :  { %255 = vmatpush3.msra.mxu1 %v109_v12 }
  0x12   :  { %256 = vmatprep.subr.mxu1 %v288_v1 }
  0x13   :  { %257 = vmatpush3.msra.mxu1 %v108_v13 }
  0xc9   :  { %v103_v15 = vpop.f32.mrf.mxu0 }
  0xca   :  { %v104_v16 = vadd.f32 %v213_v14, %v103_v15 }
  0xcb   :  { %v241_v17 = vpop.f32.mrf.mxu0 }
  0xcc   :  { %264 = vtanh.f32 %v104_v16 }
  0xd9   :  { %v265_v18 = vpop.eup %264 }
  0xda   :  { %259 = vmatmul.mubr.msk.f32.vlgmr.msra.gmra.mxu1 %vm123_vm2, %v265_v18 }
 0x19a   :  { %v193_v20 = vpop.f32.mrf.mxu1 }
 0x19b   :  { %v194_v21 = vadd.f32 %v215_v19, %v193_v20 }
 0x19c   :  { %v260_v22 = vpop.f32.mrf.mxu1 }
 0x19d   :  { %198 = vst.msk [vmem:[#allocation2] sm:$0xff] %vm197_vm3, %v194_v21 }
 0x19e   :  { %277 = shalt.err (!%p274_p4)
}
 0x19f   :  { %208 = dma.vmem_to_hbm [thread:$0]  %s206_s3, 128, %s374_s5, [#allocation3]  }
 0x1a0   :  { %286 = dma.done.wait [#allocation3], 128  }
 0x1a1   :  { %287 = vsyncadd [#allocation3], 4294967168 }
 0x1a2   :  { %212 = vsyncpa [#allocation3], 1 }

</bundles_post_ra>
